<compile_context>
chip_gen: v7x
topology: tpu7x:2x2x1
jax: 0.10.0
libtpu: 0.0.40
codegen_flags: <defaults>
</compile_context>

<pallas_src>
import functools

import jax
import jax.numpy as jnp
from jax.experimental import pallas as pl
from jax.experimental.pallas import tpu as pltpu

D_IN = 512   # input / output features
D_H = 256    # hidden features
D_Z = 30     # latent features (logical)
D_ZP = 128   # latent padded to a full lane width


def _sigmoid(v):
    # exp goes to the EUP slot; exact divide is hidden under DMA (mem-bound).
    return 1.0 / (1.0 + jnp.exp(-v))


# ----------------------------------------------------------------------------
# Kernel: one batch tile per grid step; weights stay VMEM-resident.
# ----------------------------------------------------------------------------
def vae_kernel(x_ref,
               w1_ref, b1_ref,   # Linear(512, 256)
               w2_ref, b2_ref,   # Linear(256, 30)  -> lane-padded to 128
               w3_ref, b3_ref,   # Linear(30, 256)  -> K-padded to 128
               w4_ref, b4_ref,   # Linear(256, 512)
               out_ref, z_ref):
    x = x_ref[...].astype(jnp.bfloat16)

    # encoder
    h1 = _sigmoid(jnp.dot(x, w1_ref[...],
                          preferred_element_type=jnp.float32) + b1_ref[...])
    z = _sigmoid(jnp.dot(h1.astype(jnp.bfloat16), w2_ref[...],
                         preferred_element_type=jnp.float32) + b2_ref[...])

    # decoder (padded z lanes multiply zero rows of w3 -> no effect on output)
    h2 = _sigmoid(jnp.dot(z.astype(jnp.bfloat16), w3_ref[...],
                          preferred_element_type=jnp.float32) + b3_ref[...])
    out = jnp.dot(h2.astype(jnp.bfloat16), w4_ref[...],
                  preferred_element_type=jnp.float32) + b4_ref[...]

    out_ref[...] = out.astype(out_ref.dtype)
    z_ref[...] = z.astype(z_ref.dtype)


# ----------------------------------------------------------------------------
# Wrapper
# ----------------------------------------------------------------------------
def _round_up(n, m):
    return (n + m - 1) // m * m


def _pad_params(params):
    """Cast weights to bf16 and zero-pad the 30-wide latent dim to 128 lanes."""
    w1, b1, w2, b2, w3, b3, w4, b4 = params
    w2p = jnp.zeros((D_H, D_ZP), jnp.bfloat16).at[:, :D_Z].set(
        w2.astype(jnp.bfloat16))
    b2p = jnp.zeros((1, D_ZP), jnp.float32).at[:, :D_Z].set(
        b2.astype(jnp.float32))
    w3p = jnp.zeros((D_ZP, D_H), jnp.bfloat16).at[:D_Z, :].set(
        w3.astype(jnp.bfloat16))
    return (w1.astype(jnp.bfloat16), b1.astype(jnp.float32),
            w2p, b2p,
            w3p, b3.astype(jnp.float32),
            w4.astype(jnp.bfloat16), b4.astype(jnp.float32))


@functools.partial(jax.jit,
                   static_argnames=("tb", "out_dtype", "return_padded_z"))
def vae_forward(x, params, *, tb=1024, out_dtype=jnp.bfloat16,
                return_padded_z=False):
    B = x.shape[0]
    w1, b1, w2p, b2p, w3p, b3, w4, b4 = _pad_params(params)

    # Batch tile (multiple of 8 sublanes).  Target >= 2 grid steps so that on
    # v7x the "parallel" batch axis is split across both TensorCores.
    TB = min(tb, max(8, _round_up(pl.cdiv(B, 2), 8)))
    grid = (pl.cdiv(B, TB),)   # ragged last block handled by Pallas masking

    def resident(a):
        # Same block for every grid step -> DMA'd once, stays VMEM-resident.
        return pl.BlockSpec(a.shape, lambda i: (0,) * a.ndim)

    out_itemsize = jnp.dtype(out_dtype).itemsize
    weight_bytes = sum(int(a.size) * a.dtype.itemsize
                       for a in (w1, b1, w2p, b2p, w3p, b3, w4, b4))
    cost = pl.CostEstimate(
        flops=2 * B * (D_IN * D_H + D_H * D_ZP + D_ZP * D_H + D_H * D_IN),
        transcendentals=B * (D_H + D_ZP + D_H),
        bytes_accessed=B * D_IN * x.dtype.itemsize
                       + B * (D_IN + D_ZP) * out_itemsize
                       + weight_bytes,
    )

    out, z = pl.pallas_call(
        vae_kernel,
        out_shape=(
            jax.ShapeDtypeStruct((B, D_IN), out_dtype),
            jax.ShapeDtypeStruct((B, D_ZP), out_dtype),
        ),
        grid=grid,
        in_specs=[pl.BlockSpec((TB, D_IN), lambda i: (i, 0))]
                 + [resident(a) for a in (w1, b1, w2p, b2p, w3p, b3, w4, b4)],
        out_specs=(
            pl.BlockSpec((TB, D_IN), lambda i: (i, 0)),
            pl.BlockSpec((TB, D_ZP), lambda i: (i, 0)),
        ),
        compiler_params=pltpu.CompilerParams(
            dimension_semantics=("parallel",)),
        cost_estimate=cost,
    )(x, w1, b1, w2p, b2p, w3p, b3, w4, b4)

    if return_padded_z:
        # NOTE: lanes 30..127 of z hold sigmoid(0)=0.5 filler, not real data.
        return out, z
    return out, z[:, :D_Z]


# ----------------------------------------------------------------------------
# Deterministic parameter init (mimics PyTorch Linear default: U(-k, k),
# k = 1/sqrt(fan_in)).  Weights stored as (in, out) = W.T of PyTorch (out, in).
# ----------------------------------------------------------------------------
def init_params(key):
    def linear(key, fan_in, fan_out):
        kw, kb = jax.random.split(key)
        bound = 1.0 / jnp.sqrt(fan_in)
        w = jax.random.uniform(kw, (fan_in, fan_out), jnp.float32, -bound, bound)
        b = jax.random.uniform(kb, (1, fan_out), jnp.float32, -bound, bound)
        return w, b

    k1, k2, k3, k4 = jax.random.split(key, 4)
    w1, b1 = linear(k1, D_IN, D_H)
    w2, b2 = linear(k2, D_H, D_Z)
    w3, b3 = linear(k3, D_Z, D_H)
    w4, b4 = linear(k4, D_H, D_IN)
    return (w1, b1, w2, b2, w3, b3, w4, b4)


def vae_ref(x, params):
    """Pure-JAX reference emulating bf16 matmul inputs with f32 accumulation."""
    w1, b1, w2, b2, w3, b3, w4, b4 = params
    bf = lambda a: a.astype(jnp.bfloat16).astype(jnp.float32)
    sig = jax.nn.sigmoid
    h1 = sig(bf(x) @ bf(w1) + b1)
    z = sig(bf(h1) @ bf(w2) + b2)
    h2 = sig(bf(z) @ bf(w3) + b3)
    out = bf(h2) @ bf(w4) + b4
    return out, z


if __name__ == "__main__":
    key = jax.random.PRNGKey(0)
    kx, kx2, kp = jax.random.split(key, 3)
    params = init_params(kp)

    # Small batch: single tile, exercises the small-B tile-selection path.
    B = 8
    x = jax.random.normal(kx, (B, D_IN), jnp.float32)
    out, z = jax.block_until_ready(vae_forward(x, params))
    out_r, z_r = vae_ref(x, params)
    assert out.shape == (B, D_IN) and z.shape == (B, D_Z)
    assert jnp.allclose(out.astype(jnp.float32), out_r, atol=2e-2, rtol=2e-2), \
        float(jnp.max(jnp.abs(out.astype(jnp.float32) - out_r)))
    assert jnp.allclose(z.astype(jnp.float32), z_r, atol=1e-2), \
        float(jnp.max(jnp.abs(z.astype(jnp.float32) - z_r)))

    # Batch not a multiple of the tile: exercises the 2-step grid + ragged
    # last block (no wrapper pad, OOB rows masked by Pallas).
    B2 = 300
    x2 = jax.random.normal(kx2, (B2, D_IN), jnp.float32)
    out2, z2 = jax.block_until_ready(vae_forward(x2, params))
    out2_r, z2_r = vae_ref(x2, params)
    assert out2.shape == (B2, D_IN) and z2.shape == (B2, D_Z)
    assert jnp.allclose(out2.astype(jnp.float32), out2_r, atol=2e-2, rtol=2e-2)
    assert jnp.allclose(z2.astype(jnp.float32), z2_r, atol=1e-2)

    # f32-output / padded-z variant (exact PyTorch dtype, no z column slice).
    out3, z3 = jax.block_until_ready(
        vae_forward(x, params, out_dtype=jnp.float32, return_padded_z=True))
    assert out3.dtype == jnp.float32 and z3.shape == (B, D_ZP)
    assert jnp.allclose(z3[:, :D_Z], z_r, atol=1e-2)

    print("KERNEL_OK")
</pallas_src>

<mosaic_0001>
module attributes {stable_mosaic.version = 11 : i64} {
  func.func @vae_kernel(%arg0: i32, %arg1: memref<8x512xf32, #tpu.memory_space<vmem>>, %arg2: memref<512x256xbf16, #tpu.memory_space<vmem>>, %arg3: memref<1x256xf32, #tpu.memory_space<vmem>>, %arg4: memref<256x128xbf16, #tpu.memory_space<vmem>>, %arg5: memref<1x128xf32, #tpu.memory_space<vmem>>, %arg6: memref<128x256xbf16, #tpu.memory_space<vmem>>, %arg7: memref<1x256xf32, #tpu.memory_space<vmem>>, %arg8: memref<256x512xbf16, #tpu.memory_space<vmem>>, %arg9: memref<1x512xf32, #tpu.memory_space<vmem>>, %arg10: memref<8x512xbf16, #tpu.memory_space<vmem>>, %arg11: memref<8x128xbf16, #tpu.memory_space<vmem>>) attributes {dimension_semantics = [#tpu.dimension_semantics<parallel>], iteration_bounds = array<i64: 1>, scalar_prefetch = 0 : i64, scratch_operands = 0 : i64, tpu.core_type = #tpu.core_type<tc>, window_params = [{transform_indices = @transform_0, window_bounds = array<i64: 8, 512>}, {pipeline_mode = #tpu.pipeline_mode<synchronous>, transform_indices = @transform_1, window_bounds = array<i64: 512, 256>}, {pipeline_mode = #tpu.pipeline_mode<synchronous>, transform_indices = @transform_2, window_bounds = array<i64: 1, 256>}, {pipeline_mode = #tpu.pipeline_mode<synchronous>, transform_indices = @transform_3, window_bounds = array<i64: 256, 128>}, {pipeline_mode = #tpu.pipeline_mode<synchronous>, transform_indices = @transform_4, window_bounds = array<i64: 1, 128>}, {pipeline_mode = #tpu.pipeline_mode<synchronous>, transform_indices = @transform_5, window_bounds = array<i64: 128, 256>}, {pipeline_mode = #tpu.pipeline_mode<synchronous>, transform_indices = @transform_6, window_bounds = array<i64: 1, 256>}, {pipeline_mode = #tpu.pipeline_mode<synchronous>, transform_indices = @transform_7, window_bounds = array<i64: 256, 512>}, {pipeline_mode = #tpu.pipeline_mode<synchronous>, transform_indices = @transform_8, window_bounds = array<i64: 1, 512>}, {transform_indices = @transform_9, window_bounds = array<i64: 8, 512>}, {transform_indices = @transform_10, window_bounds = array<i64: 8, 128>}]} {
    %c0 = arith.constant 0 : index
    %c0_0 = arith.constant 0 : index
    %0 = vector.load %arg1[%c0, %c0_0] : memref<8x512xf32, #tpu.memory_space<vmem>>, vector<8x512xf32>
    %1 = arith.truncf %0 : vector<8x512xf32> to vector<8x512xbf16>
    %c0_1 = arith.constant 0 : index
    %c0_2 = arith.constant 0 : index
    %2 = vector.load %arg2[%c0_1, %c0_2] : memref<512x256xbf16, #tpu.memory_space<vmem>>, vector<512x256xbf16>
    %cst = arith.constant dense<0.000000e+00> : vector<8x256xf32>
    %3 = tpu.matmul %1, %2, %cst {dimension_numbers = #tpu.dot_dimension_numbers<[1], [0], [0], [1], [0, 0, 1, 1], [], []>} : vector<8x512xbf16>, vector<512x256xbf16>, vector<8x256xf32> -> vector<8x256xf32>
    %c0_3 = arith.constant 0 : index
    %c0_4 = arith.constant 0 : index
    %4 = vector.load %arg3[%c0_3, %c0_4] : memref<1x256xf32, #tpu.memory_space<vmem>>, vector<1x256xf32>
    %5 = vector.broadcast %4 : vector<1x256xf32> to vector<8x256xf32>
    %6 = arith.addf %3, %5 : vector<8x256xf32>
    %cst_5 = arith.constant 0.000000e+00 : f32
    %7 = vector.broadcast %cst_5 : f32 to vector<8x256xf32>
    %8 = arith.subf %7, %6 : vector<8x256xf32>
    %9 = math.exp %8 : vector<8x256xf32>
    %cst_6 = arith.constant 1.000000e+00 : f32
    %10 = vector.broadcast %cst_6 : f32 to vector<8x256xf32>
    %11 = arith.addf %10, %9 : vector<8x256xf32>
    %cst_7 = arith.constant 1.000000e+00 : f32
    %12 = vector.broadcast %cst_7 : f32 to vector<8x256xf32>
    %13 = arith.divf %12, %11 : vector<8x256xf32>
    %14 = arith.truncf %13 : vector<8x256xf32> to vector<8x256xbf16>
    %c0_8 = arith.constant 0 : index
    %c0_9 = arith.constant 0 : index
    %15 = vector.load %arg4[%c0_8, %c0_9] : memref<256x128xbf16, #tpu.memory_space<vmem>>, vector<256x128xbf16>
    %cst_10 = arith.constant dense<0.000000e+00> : vector<8x128xf32>
    %16 = tpu.matmul %14, %15, %cst_10 {dimension_numbers = #tpu.dot_dimension_numbers<[1], [0], [0], [1], [0, 0, 1, 1], [], []>} : vector<8x256xbf16>, vector<256x128xbf16>, vector<8x128xf32> -> vector<8x128xf32>
    %c0_11 = arith.constant 0 : index
    %c0_12 = arith.constant 0 : index
    %17 = vector.load %arg5[%c0_11, %c0_12] : memref<1x128xf32, #tpu.memory_space<vmem>>, vector<1x128xf32>
    %18 = vector.broadcast %17 : vector<1x128xf32> to vector<8x128xf32>
    %19 = arith.addf %16, %18 : vector<8x128xf32>
    %cst_13 = arith.constant 0.000000e+00 : f32
    %20 = vector.broadcast %cst_13 : f32 to vector<8x128xf32>
    %21 = arith.subf %20, %19 : vector<8x128xf32>
    %22 = math.exp %21 : vector<8x128xf32>
    %cst_14 = arith.constant 1.000000e+00 : f32
    %23 = vector.broadcast %cst_14 : f32 to vector<8x128xf32>
    %24 = arith.addf %23, %22 : vector<8x128xf32>
    %cst_15 = arith.constant 1.000000e+00 : f32
    %25 = vector.broadcast %cst_15 : f32 to vector<8x128xf32>
    %26 = arith.divf %25, %24 : vector<8x128xf32>
    %27 = arith.truncf %26 : vector<8x128xf32> to vector<8x128xbf16>
    %c0_16 = arith.constant 0 : index
    %c0_17 = arith.constant 0 : index
    %28 = vector.load %arg6[%c0_16, %c0_17] : memref<128x256xbf16, #tpu.memory_space<vmem>>, vector<128x256xbf16>
    %cst_18 = arith.constant dense<0.000000e+00> : vector<8x256xf32>
    %29 = tpu.matmul %27, %28, %cst_18 {dimension_numbers = #tpu.dot_dimension_numbers<[1], [0], [0], [1], [0, 0, 1, 1], [], []>} : vector<8x128xbf16>, vector<128x256xbf16>, vector<8x256xf32> -> vector<8x256xf32>
    %c0_19 = arith.constant 0 : index
    %c0_20 = arith.constant 0 : index
    %30 = vector.load %arg7[%c0_19, %c0_20] : memref<1x256xf32, #tpu.memory_space<vmem>>, vector<1x256xf32>
    %31 = vector.broadcast %30 : vector<1x256xf32> to vector<8x256xf32>
    %32 = arith.addf %29, %31 : vector<8x256xf32>
    %cst_21 = arith.constant 0.000000e+00 : f32
    %33 = vector.broadcast %cst_21 : f32 to vector<8x256xf32>
    %34 = arith.subf %33, %32 : vector<8x256xf32>
    %35 = math.exp %34 : vector<8x256xf32>
    %cst_22 = arith.constant 1.000000e+00 : f32
    %36 = vector.broadcast %cst_22 : f32 to vector<8x256xf32>
    %37 = arith.addf %36, %35 : vector<8x256xf32>
    %cst_23 = arith.constant 1.000000e+00 : f32
    %38 = vector.broadcast %cst_23 : f32 to vector<8x256xf32>
    %39 = arith.divf %38, %37 : vector<8x256xf32>
    %40 = arith.truncf %39 : vector<8x256xf32> to vector<8x256xbf16>
    %c0_24 = arith.constant 0 : index
    %c0_25 = arith.constant 0 : index
    %41 = vector.load %arg8[%c0_24, %c0_25] : memref<256x512xbf16, #tpu.memory_space<vmem>>, vector<256x512xbf16>
    %cst_26 = arith.constant dense<0.000000e+00> : vector<8x512xf32>
    %42 = tpu.matmul %40, %41, %cst_26 {dimension_numbers = #tpu.dot_dimension_numbers<[1], [0], [0], [1], [0, 0, 1, 1], [], []>} : vector<8x256xbf16>, vector<256x512xbf16>, vector<8x512xf32> -> vector<8x512xf32>
    %c0_27 = arith.constant 0 : index
    %c0_28 = arith.constant 0 : index
    %43 = vector.load %arg9[%c0_27, %c0_28] : memref<1x512xf32, #tpu.memory_space<vmem>>, vector<1x512xf32>
    %44 = vector.broadcast %43 : vector<1x512xf32> to vector<8x512xf32>
    %45 = arith.addf %42, %44 : vector<8x512xf32>
    %46 = arith.truncf %45 : vector<8x512xf32> to vector<8x512xbf16>
    %c0_29 = arith.constant 0 : index
    %c0_30 = arith.constant 0 : index
    %47 = vector.load %arg10[%c0_29, %c0_30] : memref<8x512xbf16, #tpu.memory_space<vmem>>, vector<8x512xbf16>
    tpu.vector_store %arg10[%c0_29, %c0_30], %46 {strides = array<i32>} : memref<8x512xbf16, #tpu.memory_space<vmem>>, vector<8x512xbf16>,
    %48 = arith.truncf %26 : vector<8x128xf32> to vector<8x128xbf16>
    %c0_31 = arith.constant 0 : index
    %c0_32 = arith.constant 0 : index
    %49 = vector.load %arg11[%c0_31, %c0_32] : memref<8x128xbf16, #tpu.memory_space<vmem>>, vector<8x128xbf16>
    tpu.vector_store %arg11[%c0_31, %c0_32], %48 {strides = array<i32>} : memref<8x128xbf16, #tpu.memory_space<vmem>>, vector<8x128xbf16>,
    return
  }
  func.func @transform_0(%arg0: i32) -> (i32, i32) {
    %c0_i32 = arith.constant 0 : i32
    %c0_i32_0 = arith.constant 0 : i32
    return %arg0, %c0_i32 : i32, i32
  }
  func.func @transform_1(%arg0: i32) -> (i32, i32) {
    %c0_i32 = arith.constant 0 : i32
    %c0_i32_0 = arith.constant 0 : i32
    %c0_i32_1 = arith.constant 0 : i32
    return %c0_i32, %c0_i32_0 : i32, i32
  }
  func.func @transform_2(%arg0: i32) -> (i32, i32) {
    %c0_i32 = arith.constant 0 : i32
    %c0_i32_0 = arith.constant 0 : i32
    %c0_i32_1 = arith.constant 0 : i32
    return %c0_i32, %c0_i32_0 : i32, i32
  }
  func.func @transform_3(%arg0: i32) -> (i32, i32) {
    %c0_i32 = arith.constant 0 : i32
    %c0_i32_0 = arith.constant 0 : i32
    %c0_i32_1 = arith.constant 0 : i32
    return %c0_i32, %c0_i32_0 : i32, i32
  }
  func.func @transform_4(%arg0: i32) -> (i32, i32) {
    %c0_i32 = arith.constant 0 : i32
    %c0_i32_0 = arith.constant 0 : i32
    %c0_i32_1 = arith.constant 0 : i32
    return %c0_i32, %c0_i32_0 : i32, i32
  }
  func.func @transform_5(%arg0: i32) -> (i32, i32) {
    %c0_i32 = arith.constant 0 : i32
    %c0_i32_0 = arith.constant 0 : i32
    %c0_i32_1 = arith.constant 0 : i32
    return %c0_i32, %c0_i32_0 : i32, i32
  }
  func.func @transform_6(%arg0: i32) -> (i32, i32) {
    %c0_i32 = arith.constant 0 : i32
    %c0_i32_0 = arith.constant 0 : i32
    %c0_i32_1 = arith.constant 0 : i32
    return %c0_i32, %c0_i32_0 : i32, i32
  }
  func.func @transform_7(%arg0: i32) -> (i32, i32) {
    %c0_i32 = arith.constant 0 : i32
    %c0_i32_0 = arith.constant 0 : i32
    %c0_i32_1 = arith.constant 0 : i32
    return %c0_i32, %c0_i32_0 : i32, i32
  }
  func.func @transform_8(%arg0: i32) -> (i32, i32) {
    %c0_i32 = arith.constant 0 : i32
    %c0_i32_0 = arith.constant 0 : i32
    %c0_i32_1 = arith.constant 0 : i32
    return %c0_i32, %c0_i32_0 : i32, i32
  }
  func.func @transform_9(%arg0: i32) -> (i32, i32) {
    %c0_i32 = arith.constant 0 : i32
    %c0_i32_0 = arith.constant 0 : i32
    return %arg0, %c0_i32 : i32, i32
  }
  func.func @transform_10(%arg0: i32) -> (i32, i32) {
    %c0_i32 = arith.constant 0 : i32
    %c0_i32_0 = arith.constant 0 : i32
    return %arg0, %c0_i32 : i32, i32
  }
}

</mosaic_0001>

<bundles_post_ra>
// kernel: vae_forward.1
= control target key start
LH: loop header
LB: loop body
LE: loop exit
PB: predicated region body
PF: predicated region fallthrough
CT: control target
= control target key end

     0   :  { %16 = vsyncpa [#allocation3], 0  ;;  %s2515_s0 = inlined_call_operand.vmem [shape: f32[8,512], index: 0, kind: input, shape index: {}]   ;;  %s2516_s1 = inlined_call_operand.vmem [shape: bf16[512,256], index: 1, kind: input, shape index: {}]   ;;  %s2517_s2 = inlined_call_operand.vmem [shape: f32[1,256], index: 2, kind: input, shape index: {}]   ;;  %s2518_s3 = inlined_call_operand.vmem [shape: bf16[256,128], index: 3, kind: input, shape index: {}]   ;;  %s2519_s4 = inlined_call_operand.vmem [shape: f32[1,128], index: 4, kind: input, shape index: {}]   ;;  %s2520_s5 = inlined_call_operand.vmem [shape: bf16[128,256], index: 5, kind: input, shape index: {}]   ;;  %s2521_s6 = inlined_call_operand.vmem [shape: f32[1,256], index: 6, kind: input, shape index: {}]   ;;  %s2522_s7 = inlined_call_operand.vmem [shape: bf16[256,512], index: 7, kind: input, shape index: {}]   ;;  %s2523_s8 = inlined_call_operand.vmem [shape: f32[1,512], index: 8, kind: input, shape index: {}]   ;;  %s2524_s9 = inlined_call_operand.hbm [shape: bf16[8,512], index: 9, kind: output, shape index: {0}]   ;;  %s2525_s10 = inlined_call_operand.hbm [shape: bf16[8,128], index: 10, kind: output, shape index: {1}]  }
   0x1   :  { %v1613_v0 = vld [vmem:[%s2516_s1 + $0x4] ss:$8 sps:$4 sm:$0xff]   ;;  %v1615_v1 = vld [vmem:[%s2516_s1] ss:$8 sps:$4 sm:$0xff]   ;;  %v1616_v2 = vld [vmem:[%s2516_s1 + $0x14] ss:$8 sps:$4 sm:$0xff]  }
   0x2   :  { %441 = vmatprep.subr.bf16.mxu0 %v1613_v0  ;;  %v1618_v3 = vld [vmem:[%s2516_s1 + $0x10] ss:$8 sps:$4 sm:$0xff]   ;;  %v1619_v4 = vld [vmem:[%s2516_s1 + $0x24] ss:$8 sps:$4 sm:$0xff]   ;;  %v1621_v5 = vld [vmem:[%s2516_s1 + $0x20] ss:$8 sps:$4 sm:$0xff]  }
   0x3   :  { %442 = vmatpush1.bf16.msra.mxu0 %v1615_v1  ;;  %v1622_v6 = vld [vmem:[%s2516_s1 + $0x34] ss:$8 sps:$4 sm:$0xff]   ;;  %v1624_v7 = vld [vmem:[%s2516_s1 + $0x30] ss:$8 sps:$4 sm:$0xff]   ;;  %v1625_v8 = vld [vmem:[%s2516_s1 + $0x44] ss:$8 sps:$4 sm:$0xff]  }
   0x4   :  { %443 = vmatprep.subr.bf16.mxu0 %v1616_v2  ;;  %v1627_v9 = vld [vmem:[%s2516_s1 + $0x40] ss:$8 sps:$4 sm:$0xff]   ;;  %v1628_v10 = vld [vmem:[%s2516_s1 + $0x54] ss:$8 sps:$4 sm:$0xff]   ;;  %v1630_v11 = vld [vmem:[%s2516_s1 + $0x50] ss:$8 sps:$4 sm:$0xff]  }
   0x5   :  { %v1631_v12 = vld [vmem:[%s2516_s1 + $0x64] ss:$8 sps:$4 sm:$0xff]   ;;  %v1633_v15 = vld [vmem:[%s2516_s1 + $0x60] ss:$8 sps:$4 sm:$0xff]   ;;  %v1634_v16 = vld [vmem:[%s2516_s1 + $0x74] ss:$8 sps:$4 sm:$0xff]  }
   0x6   :  { %v38_v13 = vld [vmem:[%s2515_s0 + $0x8] sm:$0xff]  ;;  %v1636_v17 = vld [vmem:[%s2516_s1 + $0x70] ss:$8 sps:$4 sm:$0xff]   ;;  %v1640_v20 = vld [vmem:[%s2516_s1 + $0x94] ss:$8 sps:$4 sm:$0xff]  }
   0x7   :  { %444 = vmatpush1.bf16.msra.mxu0 %v1618_v3  ;;  %v42_v14 = vpack.c.bf16 %v38_v13, %v38_v13  ;;  %v1637_v18 = vld [vmem:[%s2516_s1 + $0x84] ss:$8 sps:$4 sm:$0xff]   ;;  %v1639_v19 = vld [vmem:[%s2516_s1 + $0x80] ss:$8 sps:$4 sm:$0xff]   ;;  %v1642_v21 = vld [vmem:[%s2516_s1 + $0x90] ss:$8 sps:$4 sm:$0xff]  }
   0x8   :  { %445 = vmatprep.subr.bf16.mxu0 %v1619_v4  ;;  %v1643_v22 = vld [vmem:[%s2516_s1 + $0xa4] ss:$8 sps:$4 sm:$0xff]   ;;  %v1645_v23 = vld [vmem:[%s2516_s1 + $0xa0] ss:$8 sps:$4 sm:$0xff]   ;;  %v1646_v24 = vld [vmem:[%s2516_s1 + $0xb4] ss:$8 sps:$4 sm:$0xff]  }
   0x9   :  { %473 = vmatprep.mubr.bf16.mxu0 %v42_v14  ;;  %v1648_v25 = vld [vmem:[%s2516_s1 + $0xb0] ss:$8 sps:$4 sm:$0xff]   ;;  %v1649_v26 = vld [vmem:[%s2516_s1 + $0xc4] ss:$8 sps:$4 sm:$0xff]   ;;  %v1651_v27 = vld [vmem:[%s2516_s1 + $0xc0] ss:$8 sps:$4 sm:$0xff]  }
   0xa   :  { %v1652_v28 = vld [vmem:[%s2516_s1 + $0xd4] ss:$8 sps:$4 sm:$0xff]   ;;  %v1654_v29 = vld [vmem:[%s2516_s1 + $0xd0] ss:$8 sps:$4 sm:$0xff]   ;;  %v1655_v30 = vld [vmem:[%s2516_s1 + $0xe4] ss:$8 sps:$4 sm:$0xff]  }
   0xb   :  { %446 = vmatpush1.bf16.msra.mxu0 %v1621_v5  ;;  %v1657_v31 = vld [vmem:[%s2516_s1 + $0xe0] ss:$8 sps:$4 sm:$0xff]   ;;  %v1658_v32 = vld [vmem:[%s2516_s1 + $0xf4] ss:$8 sps:$4 sm:$0xff]   ;;  %v1660_v33 = vld [vmem:[%s2516_s1 + $0xf0] ss:$8 sps:$4 sm:$0xff]  }
   0xc   :  { %447 = vmatprep.subr.bf16.mxu0 %v1622_v6  ;;  %v37_v34 = vld [vmem:[%s2515_s0] sm:$0xff]  ;;  %v40_v36 = vld [vmem:[%s2515_s0 + $0x18] sm:$0xff] }
   0xd   :  { %v1663_v35 = vld [vmem:[%s2516_s1 + $0x104] ss:$8 sps:$4 sm:$0xff]   ;;  %v1661_v37 = vld [vmem:[%s2516_s1 + $0x100] ss:$8 sps:$4 sm:$0xff]   ;;  %v41_v38 = vpack.c.bf16 %v37_v34, %v37_v34  ;;  %v1666_v39 = vld [vmem:[%s2516_s1 + $0x114] ss:$8 sps:$4 sm:$0xff]   ;;  %v44_v40 = vpack.c.bf16 %v40_v36, %v40_v36 }
   0xe   :  { %v1664_v41 = vld [vmem:[%s2516_s1 + $0x110] ss:$8 sps:$4 sm:$0xff]   ;;  %v1669_v42 = vld [vmem:[%s2516_s1 + $0x124] ss:$8 sps:$4 sm:$0xff]   ;;  %v1667_v43 = vld [vmem:[%s2516_s1 + $0x120] ss:$8 sps:$4 sm:$0xff]  }
   0xf   :  { %448 = vmatpush1.bf16.msra.mxu0 %v1624_v7  ;;  %v1672_v44 = vld [vmem:[%s2516_s1 + $0x134] ss:$8 sps:$4 sm:$0xff]   ;;  %v1670_v45 = vld [vmem:[%s2516_s1 + $0x130] ss:$8 sps:$4 sm:$0xff]   ;;  %v1675_v46 = vld [vmem:[%s2516_s1 + $0x144] ss:$8 sps:$4 sm:$0xff]  }
  0x10   :  { %449 = vmatprep.subr.bf16.mxu0 %v1625_v8  ;;  %v1673_v47 = vld [vmem:[%s2516_s1 + $0x140] ss:$8 sps:$4 sm:$0xff]   ;;  %v1678_v48 = vld [vmem:[%s2516_s1 + $0x154] ss:$8 sps:$4 sm:$0xff]  }
  0x13   :  { %450 = vmatpush1.bf16.msra.mxu0 %v1627_v9 }
  0x14   :  { %451 = vmatprep.subr.bf16.mxu0 %v1628_v10 }
  0x17   :  { %452 = vmatpush1.bf16.msra.mxu0 %v1630_v11 }
  0x18   :  { %453 = vmatprep.subr.bf16.mxu0 %v1631_v12 }
  0x1b   :  { %454 = vmatpush1.bf16.msra.mxu0 %v1633_v15 }
  0x1c   :  { %455 = vmatprep.subr.bf16.mxu0 %v1634_v16 }
  0x1f   :  { %456 = vmatpush1.bf16.msra.mxu0 %v1636_v17 }
  0x20   :  { %457 = vmatprep.subr.bf16.mxu0 %v1637_v18 }
  0x23   :  { %458 = vmatpush1.bf16.msra.mxu0 %v1639_v19 }
  0x24   :  { %459 = vmatprep.subr.bf16.mxu0 %v1640_v20 }
  0x27   :  { %460 = vmatpush1.bf16.msra.mxu0 %v1642_v21 }
  0x28   :  { %461 = vmatprep.subr.bf16.mxu0 %v1643_v22 }
  0x2b   :  { %462 = vmatpush1.bf16.msra.mxu0 %v1645_v23 }
  0x2c   :  { %463 = vmatprep.subr.bf16.mxu0 %v1646_v24 }
  0x2f   :  { %464 = vmatpush1.bf16.msra.mxu0 %v1648_v25 }
  0x30   :  { %465 = vmatprep.subr.bf16.mxu0 %v1649_v26 }
  0x33   :  { %466 = vmatpush1.bf16.msra.mxu0 %v1651_v27 }
  0x34   :  { %467 = vmatprep.subr.bf16.mxu0 %v1652_v28 }
  0x37   :  { %468 = vmatpush1.bf16.msra.mxu0 %v1654_v29 }
  0x38   :  { %469 = vmatprep.subr.bf16.mxu0 %v1655_v30 }
  0x3b   :  { %470 = vmatpush1.bf16.msra.mxu0 %v1657_v31 }
  0x3c   :  { %471 = vmatprep.subr.bf16.mxu0 %v1658_v32 }
  0x3f   :  { %472 = vmatpush1.bf16.msra.mxu0 %v1660_v33 }
  0x40   :  { %482 = vmatprep.subr.bf16.mxu0 %v1663_v35 }
  0x42   :  { %474 = vmatmul.mubr.bf16.vlgmr.msra.gmra.mrb[0].mxu0 %v41_v38 }
  0x43   :  { %483 = vmatpush1.bf16.msra.mxu0 %v1661_v37  ;;  %514 = vmatprep.mubr.bf16.mxu0 %v44_v40 }
  0x44   :  { %484 = vmatprep.subr.bf16.mxu0 %v1666_v39 }
  0x47   :  { %485 = vmatpush1.bf16.msra.mxu0 %v1664_v41 }
  0x48   :  { %486 = vmatprep.subr.bf16.mxu0 %v1669_v42 }
  0x4b   :  { %487 = vmatpush1.bf16.msra.mxu0 %v1667_v43 }
  0x4c   :  { %488 = vmatprep.subr.bf16.mxu0 %v1672_v44 }
  0x4f   :  { %489 = vmatpush1.bf16.msra.mxu0 %v1670_v45 }
  0x50   :  { %490 = vmatprep.subr.bf16.mxu0 %v1675_v46 }
  0x51   :  { %17 = vsyncpa [#allocation5], 0  ;;  %v1676_v49 = vld [vmem:[%s2516_s1 + $0x150] ss:$8 sps:$4 sm:$0xff]   ;;  %v1681_v50 = vld [vmem:[%s2516_s1 + $0x164] ss:$8 sps:$4 sm:$0xff]   ;;  %v111_v24 = vlaneseq }
  0x52   :  { %v1679_v51 = vld [vmem:[%s2516_s1 + $0x160] ss:$8 sps:$4 sm:$0xff]   ;;  %v1684_v52 = vld [vmem:[%s2516_s1 + $0x174] ss:$8 sps:$4 sm:$0xff]   ;;  %v1682_v53 = vld [vmem:[%s2516_s1 + $0x170] ss:$8 sps:$4 sm:$0xff]  }
  0x53   :  { %491 = vmatpush1.bf16.msra.mxu0 %v1673_v47  ;;  %v1687_v54 = vld [vmem:[%s2516_s1 + $0x184] ss:$8 sps:$4 sm:$0xff]   ;;  %v1685_v55 = vld [vmem:[%s2516_s1 + $0x180] ss:$8 sps:$4 sm:$0xff]   ;;  %v1690_v56 = vld [vmem:[%s2516_s1 + $0x194] ss:$8 sps:$4 sm:$0xff]  }
  0x54   :  { %492 = vmatprep.subr.bf16.mxu0 %v1678_v48  ;;  %v1688_v57 = vld [vmem:[%s2516_s1 + $0x190] ss:$8 sps:$4 sm:$0xff]   ;;  %v1693_v58 = vld [vmem:[%s2516_s1 + $0x1a4] ss:$8 sps:$4 sm:$0xff]   ;;  %v1691_v59 = vld [vmem:[%s2516_s1 + $0x1a0] ss:$8 sps:$4 sm:$0xff]  }
  0x55   :  { %v1696_v60 = vld [vmem:[%s2516_s1 + $0x1b4] ss:$8 sps:$4 sm:$0xff]   ;;  %v1694_v61 = vld [vmem:[%s2516_s1 + $0x1b0] ss:$8 sps:$4 sm:$0xff]   ;;  %v1699_v62 = vld [vmem:[%s2516_s1 + $0x1c4] ss:$8 sps:$4 sm:$0xff]  }
  0x56   :  { %v1697_v63 = vld [vmem:[%s2516_s1 + $0x1c0] ss:$8 sps:$4 sm:$0xff]   ;;  %v1702_v0 = vld [vmem:[%s2516_s1 + $0x1d4] ss:$8 sps:$4 sm:$0xff]   ;;  %v1700_v1 = vld [vmem:[%s2516_s1 + $0x1d0] ss:$8 sps:$4 sm:$0xff]  }
  0x57   :  { %493 = vmatpush1.bf16.msra.mxu0 %v1676_v49  ;;  %v1705_v2 = vld [vmem:[%s2516_s1 + $0x1e4] ss:$8 sps:$4 sm:$0xff]   ;;  %v1703_v3 = vld [vmem:[%s2516_s1 + $0x1e0] ss:$8 sps:$4 sm:$0xff]   ;;  %v1708_v4 = vld [vmem:[%s2516_s1 + $0x1f4] ss:$8 sps:$4 sm:$0xff]  }
  0x58   :  { %494 = vmatprep.subr.bf16.mxu0 %v1681_v50  ;;  %v1706_v5 = vld [vmem:[%s2516_s1 + $0x1f0] ss:$8 sps:$4 sm:$0xff]   ;;  %v1709_v8 = vld [vmem:[%s2518_s3 + $0x40] sm:$0xff]   ;;  %v1711_v10 = vld [vmem:[%s2518_s3 + $0x48] sm:$0xff]   ;;  %v2223_v25 = vshrl.u32 %v111_v24, 7 }
  0x59   :  { %v39_v6 = vld [vmem:[%s2515_s0 + $0x10] sm:$0xff]  ;;  %v1710_v9 = vld [vmem:[%s2518_s3] sm:$0xff]   ;;  %1582 = vmatprep.subr.bf16.mxu1 %v1709_v8  ;;  %v1712_v11 = vld [vmem:[%s2518_s3 + $0x8] sm:$0xff]  }
  0x5a   :  { %v43_v7 = vpack.c.bf16 %v39_v6, %v39_v6  ;;  %1583 = vmatpush3.bf16.msra.mxu1 %v1710_v9  ;;  %v1713_v12 = vld [vmem:[%s2518_s3 + $0x50] sm:$0xff]   ;;  %v1715_v14 = vld [vmem:[%s2518_s3 + $0x58] sm:$0xff]   ;;  %v1717_v16 = vld [vmem:[%s2518_s3 + $0x60] sm:$0xff]   ;;  %v2226_v26 = vsub.s32 0, %v2223_v25  ;;  %v2232_v28 = vsub.s32 1, %v2223_v25 }
  0x5b   :  { %495 = vmatpush1.bf16.msra.mxu0 %v1679_v51  ;;  %1584 = vmatprep.subr.bf16.mxu1 %v1711_v10  ;;  %v1714_v13 = vld [vmem:[%s2518_s3 + $0x10] sm:$0xff]   ;;  %v1716_v15 = vld [vmem:[%s2518_s3 + $0x18] sm:$0xff]   ;;  %v1718_v17 = vld [vmem:[%s2518_s3 + $0x20] sm:$0xff]  }
  0x5c   :  { %496 = vmatprep.subr.bf16.mxu0 %v1684_v52  ;;  %v1719_v18 = vld [vmem:[%s2518_s3 + $0x68] sm:$0xff]   ;;  %v1721_v20 = vld [vmem:[%s2518_s3 + $0x70] sm:$0xff]   ;;  %v1723_v22 = vld [vmem:[%s2518_s3 + $0x78] sm:$0xff]  }
  0x5d   :  { %v1720_v19 = vld [vmem:[%s2518_s3 + $0x28] sm:$0xff]   ;;  %v1722_v21 = vld [vmem:[%s2518_s3 + $0x30] sm:$0xff]   ;;  %v1724_v23 = vld [vmem:[%s2518_s3 + $0x38] sm:$0xff]  }
  0x5e   :  { %1585 = vmatpush3.bf16.msra.mxu1 %v1712_v11  ;;  %v109_v27 = vld [vmem:[%s2517_s2] sm:$0x3]  ;;  %v1727_v49 = vld [vmem:[%s2520_s5 + $0x4] ss:$8 sps:$4 sm:$0xff]   ;;  %v1730_v51 = vld [vmem:[%s2520_s5 + $0x14] ss:$8 sps:$4 sm:$0xff]  }
  0x5f   :  { %497 = vmatpush1.bf16.msra.mxu0 %v1682_v53  ;;  %1586 = vmatprep.subr.bf16.mxu1 %v1713_v12  ;;  %v114_v29 = vrot.slane %v109_v27, %v2226_v26  ;;  %v118_v30 = vrot.slane %v109_v27, %v2232_v28  ;;  %v1725_v50 = vld [vmem:[%s2520_s5] ss:$8 sps:$4 sm:$0xff]   ;;  %v1728_v52 = vld [vmem:[%s2520_s5 + $0x10] ss:$8 sps:$4 sm:$0xff]   ;;  %v1733_v53 = vld [vmem:[%s2520_s5 + $0x24] ss:$8 sps:$4 sm:$0xff]  }
  0x60   :  { %498 = vmatprep.subr.bf16.mxu0 %v1687_v54  ;;  %v1731_v54 = vld [vmem:[%s2520_s5 + $0x20] ss:$8 sps:$4 sm:$0xff]   ;;  %v1772_v9 = vld [vmem:[%s2522_s7 + $0x6c] ss:$16 sps:$4 sm:$0xff]  }
  0x61   :  { %v1758_v6 = vld [vmem:[%s2522_s7 + $0x28] ss:$16 sps:$4 sm:$0xff]   ;;  %v1778_v11 = vld [vmem:[%s2522_s7 + $0x8c] ss:$16 sps:$4 sm:$0xff]  }
  0x62   :  { %1587 = vmatpush3.bf16.msra.mxu1 %v1714_v13  ;;  %v1764_v8 = vld [vmem:[%s2522_s7 + $0x48] ss:$16 sps:$4 sm:$0xff]   ;;  %v1784_v13 = vld [vmem:[%s2522_s7 + $0xac] ss:$16 sps:$4 sm:$0xff]  }
  0x63   :  { %499 = vmatpush1.bf16.msra.mxu0 %v1685_v55  ;;  %1588 = vmatprep.subr.bf16.mxu1 %v1715_v14  ;;  %v1736_v55 = vld [vmem:[%s2520_s5 + $0x34] ss:$8 sps:$4 sm:$0xff]   ;;  %v1770_v10 = vld [vmem:[%s2522_s7 + $0x68] ss:$16 sps:$4 sm:$0xff]  }
  0x64   :  { %500 = vmatprep.subr.bf16.mxu0 %v1690_v56  ;;  %v1734_v56 = vld [vmem:[%s2520_s5 + $0x30] ss:$8 sps:$4 sm:$0xff]  }
  0x65   :  { %v1776_v12 = vld [vmem:[%s2522_s7 + $0x88] ss:$16 sps:$4 sm:$0xff]  }
  0x66   :  { %1589 = vmatpush3.bf16.msra.mxu1 %v1716_v15  ;;  %v1782_v14 = vld [vmem:[%s2522_s7 + $0xa8] ss:$16 sps:$4 sm:$0xff]   ;;  %v1790_v15 = vld [vmem:[%s2522_s7 + $0xcc] ss:$16 sps:$4 sm:$0xff]  }
  0x67   :  { %501 = vmatpush1.bf16.msra.mxu0 %v1688_v57  ;;  %1590 = vmatprep.subr.bf16.mxu1 %v1717_v16  ;;  %v1739_v57 = vld [vmem:[%s2520_s5 + $0x44] ss:$8 sps:$4 sm:$0xff]   ;;  %v1788_v16 = vld [vmem:[%s2522_s7 + $0xc8] ss:$16 sps:$4 sm:$0xff]  }
  0x68   :  { %502 = vmatprep.subr.bf16.mxu0 %v1693_v58  ;;  %v1737_v58 = vld [vmem:[%s2520_s5 + $0x40] ss:$8 sps:$4 sm:$0xff]  }
  0x6a   :  { %1591 = vmatpush3.bf16.msra.mxu1 %v1718_v17  ;;  %v1796_v17 = vld [vmem:[%s2522_s7 + $0xec] ss:$16 sps:$4 sm:$0xff]  }
  0x6b   :  { %503 = vmatpush1.bf16.msra.mxu0 %v1691_v59  ;;  %1592 = vmatprep.subr.bf16.mxu1 %v1719_v18  ;;  %v1742_v59 = vld [vmem:[%s2520_s5 + $0x54] ss:$8 sps:$4 sm:$0xff]   ;;  %v1794_v18 = vld [vmem:[%s2522_s7 + $0xe8] ss:$16 sps:$4 sm:$0xff]  }
  0x6c   :  { %504 = vmatprep.subr.bf16.mxu0 %v1696_v60  ;;  %v1740_v60 = vld [vmem:[%s2520_s5 + $0x50] ss:$8 sps:$4 sm:$0xff]  }
  0x6e   :  { %1593 = vmatpush3.bf16.msra.mxu1 %v1720_v19 }
  0x6f   :  { %505 = vmatpush1.bf16.msra.mxu0 %v1694_v61  ;;  %1594 = vmatprep.subr.bf16.mxu1 %v1721_v20  ;;  %v1745_v61 = vld [vmem:[%s2520_s5 + $0x64] ss:$8 sps:$4 sm:$0xff]   ;;  %v1481_v20 = vld [vmem:[%s2519_s4] ss:$0 sm:$0xff] }
  0x70   :  { %506 = vmatprep.subr.bf16.mxu0 %v1699_v62  ;;  %v1743_v62 = vld [vmem:[%s2520_s5 + $0x60] ss:$8 sps:$4 sm:$0xff]  }
  0x72   :  { %1595 = vmatpush3.bf16.msra.mxu1 %v1722_v21 }
  0x73   :  { %507 = vmatpush1.bf16.msra.mxu0 %v1697_v63  ;;  %1596 = vmatprep.subr.bf16.mxu1 %v1723_v22  ;;  %v1913_v63 = vmov 0  }
  0x74   :  { %508 = vmatprep.subr.bf16.mxu0 %v1702_v0  ;;  %v1748_v0 = vld [vmem:[%s2520_s5 + $0x74] ss:$8 sps:$4 sm:$0xff]  }
  0x76   :  { %1597 = vmatpush3.bf16.msra.mxu1 %v1724_v23 }
  0x77   :  { %509 = vmatpush1.bf16.msra.mxu0 %v1700_v1  ;;  %827 = vmatprep.subr.bf16.mxu1 %v1727_v49  ;;  %v1746_v1 = vld [vmem:[%s2520_s5 + $0x70] ss:$8 sps:$4 sm:$0xff]  }
  0x78   :  { %510 = vmatprep.subr.bf16.mxu0 %v1705_v2  ;;  %v1751_v2 = vld [vmem:[%s2522_s7 + $0x4] ss:$16 sps:$4 sm:$0xff]   ;;  %v1791_v49 = vld [vmem:[%s2522_s7 + $0xe0] ss:$16 sps:$4 sm:$0xff]  }
  0x7b   :  { %511 = vmatpush1.bf16.msra.mxu0 %v1703_v3  ;;  %v1752_v3 = vld [vmem:[%s2522_s7 + $0x8] ss:$16 sps:$4 sm:$0xff]  }
  0x7c   :  { %512 = vmatprep.subr.bf16.mxu0 %v1708_v4  ;;  %v1754_v4 = vld [vmem:[%s2522_s7 + $0xc] ss:$16 sps:$4 sm:$0xff]  }
  0x7f   :  { %513 = vmatpush1.bf16.msra.mxu0 %v1706_v5  ;;  %v1760_v5 = vld [vmem:[%s2522_s7 + $0x2c] ss:$16 sps:$4 sm:$0xff]  }
  0x80   :  { %1329 = vmatprep.subr.bf16.mxu0 %v1754_v4  ;;  %v1821_v4 = vld [vmem:[%s2522_s7 + $0x180] ss:$16 sps:$4 sm:$0xff]  }
  0x82   :  { %515 = vmatmul.mubr.bf16.vlgmr.msra.gmra.mrb[0].mxu0 %v43_v7  ;;  %v1766_v7 = vld [vmem:[%s2522_s7 + $0x4c] ss:$16 sps:$4 sm:$0xff]  }
  0x83   :  { %1330 = vmatpush1.bf16.msra.mxu0 %v1752_v3  ;;  %v1826_v3 = vld [vmem:[%s2522_s7 + $0x18c] ss:$16 sps:$4 sm:$0xff]  }
  0x84   :  { %1331 = vmatprep.subr.bf16.mxu0 %v1760_v5  ;;  %v1824_v5 = vld [vmem:[%s2522_s7 + $0x188] ss:$16 sps:$4 sm:$0xff]  }
  0x87   :  { %1332 = vmatpush1.bf16.msra.mxu0 %v1758_v6  ;;  %v1827_v6 = vld [vmem:[%s2522_s7 + $0x1a0] ss:$16 sps:$4 sm:$0xff]  }
  0x88   :  { %1333 = vmatprep.subr.bf16.mxu0 %v1766_v7  ;;  %v1829_v7 = vld [vmem:[%s2522_s7 + $0x1a4] ss:$16 sps:$4 sm:$0xff]  }
  0x8b   :  { %1334 = vmatpush1.bf16.msra.mxu0 %v1764_v8  ;;  %v1830_v8 = vld [vmem:[%s2522_s7 + $0x1a8] ss:$16 sps:$4 sm:$0xff]  }
  0x8c   :  { %1335 = vmatprep.subr.bf16.mxu0 %v1772_v9  ;;  %v1832_v9 = vld [vmem:[%s2522_s7 + $0x1ac] ss:$16 sps:$4 sm:$0xff]  }
  0x8f   :  { %1336 = vmatpush1.bf16.msra.mxu0 %v1770_v10  ;;  %v1835_v10 = vld [vmem:[%s2522_s7 + $0x1c4] ss:$16 sps:$4 sm:$0xff]  }
  0x90   :  { %1337 = vmatprep.subr.bf16.mxu0 %v1778_v11  ;;  %v1838_v11 = vld [vmem:[%s2522_s7 + $0x1cc] ss:$16 sps:$4 sm:$0xff]  }
  0x93   :  { %1338 = vmatpush1.bf16.msra.mxu0 %v1776_v12  ;;  %v1833_v12 = vld [vmem:[%s2522_s7 + $0x1c0] ss:$16 sps:$4 sm:$0xff]  }
  0x94   :  { %1339 = vmatprep.subr.bf16.mxu0 %v1784_v13  ;;  %v1836_v13 = vld [vmem:[%s2522_s7 + $0x1c8] ss:$16 sps:$4 sm:$0xff]  }
  0x97   :  { %1340 = vmatpush1.bf16.msra.mxu0 %v1782_v14  ;;  %v1841_v14 = vld [vmem:[%s2522_s7 + $0x1e4] ss:$16 sps:$4 sm:$0xff]  }
  0x98   :  { %1341 = vmatprep.subr.bf16.mxu0 %v1790_v15  ;;  %v1844_v15 = vld [vmem:[%s2522_s7 + $0x1ec] ss:$16 sps:$4 sm:$0xff]  }
  0x9b   :  { %1342 = vmatpush1.bf16.msra.mxu0 %v1788_v16  ;;  %v1839_v16 = vld [vmem:[%s2522_s7 + $0x1e0] ss:$16 sps:$4 sm:$0xff]  }
  0x9c   :  { %1343 = vmatprep.subr.bf16.mxu0 %v1796_v17  ;;  %v1842_v17 = vld [vmem:[%s2522_s7 + $0x1e8] ss:$16 sps:$4 sm:$0xff]  }
  0x9f   :  { %1344 = vmatpush1.bf16.msra.mxu0 %v1794_v18  ;;  %v735_v18 = vld [vmem:[%s2521_s6] sm:$0x3]  ;;  %s1914_s6 = smov [#allocation4]  }
 0x155   :  { %v516_v31 = vpop.f32.mrb[0].mxu0 }
 0x156   :  { %v1604_v32 = vadd.f32 %v516_v31, %v114_v29  ;;  %v518_v33 = vpop.f32.mrb[1].mxu0 }
 0x157   :  { %v1605_v34 = vadd.f32 %v518_v33, %v118_v30  ;;  %v520_v35 = vpop.f32.mrb[2].mxu0 }
 0x158   :  { %v523_v36 = vsub.f32 0.0, %v1604_v32  ;;  %v521_v37 = vpop.f32.mrb[3].mxu0 }
 0x159   :  { %v524_v38 = vsub.f32 0.0, %v1605_v34  ;;  %v1749_v34 = vld [vmem:[%s2522_s7] ss:$16 sps:$4 sm:$0xff]  }
 0x15a   :  { %v525_v39 = vmul.f32 1.442695, %v523_v36  ;;  %v1757_v36 = vld [vmem:[%s2522_s7 + $0x24] ss:$16 sps:$4 sm:$0xff]   ;;  %v1755_v37 = vld [vmem:[%s2522_s7 + $0x20] ss:$16 sps:$4 sm:$0xff]  }
 0x15b   :  { %v527_v40 = vmul.f32 1.442695, %v524_v38  ;;  %v1763_v38 = vld [vmem:[%s2522_s7 + $0x44] ss:$16 sps:$4 sm:$0xff]  }
 0x15c   :  { %1845 = vpow2.f32 %v525_v39  ;;  %v1761_v39 = vld [vmem:[%s2522_s7 + $0x40] ss:$16 sps:$4 sm:$0xff]  }
 0x15d   :  { %1847 = vpow2.f32 %v527_v40  ;;  %v1769_v40 = vld [vmem:[%s2522_s7 + $0x64] ss:$16 sps:$4 sm:$0xff]  }
 0x166   :  { %v1846_v41 = vpop.eup %1845 }
 0x167   :  { %v1848_v42 = vpop.eup %1847  ;;  %v529_v43 = vadd.f32 1.0, %v1846_v41  ;;  %v1767_v41 = vld [vmem:[%s2522_s7 + $0x60] ss:$16 sps:$4 sm:$0xff]  }
 0x168   :  { %v530_v44 = vadd.f32 1.0, %v1848_v42  ;;  %v1775_v42 = vld [vmem:[%s2522_s7 + $0x84] ss:$16 sps:$4 sm:$0xff]  }
 0x169   :  { %1849 = vrcp.f32 %v529_v43  ;;  %v1773_v43 = vld [vmem:[%s2522_s7 + $0x80] ss:$16 sps:$4 sm:$0xff]  }
 0x16a   :  { %1851 = vrcp.f32 %v530_v44  ;;  %v1781_v44 = vld [vmem:[%s2522_s7 + $0xa4] ss:$16 sps:$4 sm:$0xff]  }
 0x173   :  { %v1850_v45 = vpop.eup %1849 }
 0x174   :  { %v1852_v46 = vpop.eup %1851  ;;  %v535_v48 = vpack.c.bf16 %v1850_v45, %v1850_v45  ;;  %v1779_v45 = vld [vmem:[%s2522_s7 + $0xa0] ss:$16 sps:$4 sm:$0xff]  }
 0x175   :  { %v536_v47 = vpack.c.bf16 %v1852_v46, %v1852_v46  ;;  %v1787_v46 = vld [vmem:[%s2522_s7 + $0xc4] ss:$16 sps:$4 sm:$0xff]  }
 0x177   :  { %704 = vmatprep.mubr.bf16.mxu1 %v536_v47  ;;  %v1785_v47 = vld [vmem:[%s2522_s7 + $0xc0] ss:$16 sps:$4 sm:$0xff]  }
 0x178   :  { %705 = vmatmul.mubr.bf16.vlgmr.msra.gmra.mrb[0].mxu1 %v535_v48  ;;  %v1793_v48 = vld [vmem:[%s2522_s7 + $0xe4] ss:$16 sps:$4 sm:$0xff]  }
 0x179   :  { %828 = vmatpush1.bf16.msra.mxu1 %v1725_v50  ;;  %859 = vmatprep.mubr.bf16.mxu1 %v1913_v63  ;;  %v1799_v50 = vld [vmem:[%s2522_s7 + $0x104] ss:$16 sps:$4 sm:$0xff]   ;;  %v1820_v63 = vld [vmem:[%s2522_s7 + $0x16c] ss:$16 sps:$4 sm:$0xff]  }
 0x17a   :  { %829 = vmatprep.subr.bf16.mxu1 %v1730_v51  ;;  %v1802_v51 = vld [vmem:[%s2522_s7 + $0x10c] ss:$16 sps:$4 sm:$0xff]  }
 0x17b   :  { %1345 = vmatprep.subr.bf16.mxu0 %v1802_v51 }
 0x17d   :  { %830 = vmatpush1.bf16.msra.mxu1 %v1728_v52  ;;  %v1797_v52 = vld [vmem:[%s2522_s7 + $0x100] ss:$16 sps:$4 sm:$0xff]  }
 0x17e   :  { %831 = vmatprep.subr.bf16.mxu1 %v1733_v53  ;;  %v1800_v53 = vld [vmem:[%s2522_s7 + $0x108] ss:$16 sps:$4 sm:$0xff]  }
 0x17f   :  { %1346 = vmatpush1.bf16.msra.mxu0 %v1800_v53 }
 0x181   :  { %832 = vmatpush1.bf16.msra.mxu1 %v1731_v54  ;;  %v1805_v54 = vld [vmem:[%s2522_s7 + $0x124] ss:$16 sps:$4 sm:$0xff]  }
 0x182   :  { %833 = vmatprep.subr.bf16.mxu1 %v1736_v55  ;;  %v1808_v55 = vld [vmem:[%s2522_s7 + $0x12c] ss:$16 sps:$4 sm:$0xff]  }
 0x183   :  { %1347 = vmatprep.subr.bf16.mxu0 %v1808_v55 }
 0x185   :  { %834 = vmatpush1.bf16.msra.mxu1 %v1734_v56  ;;  %v1803_v56 = vld [vmem:[%s2522_s7 + $0x120] ss:$16 sps:$4 sm:$0xff]  }
 0x186   :  { %835 = vmatprep.subr.bf16.mxu1 %v1739_v57  ;;  %v1806_v57 = vld [vmem:[%s2522_s7 + $0x128] ss:$16 sps:$4 sm:$0xff]  }
 0x187   :  { %1348 = vmatpush1.bf16.msra.mxu0 %v1806_v57 }
 0x189   :  { %836 = vmatpush1.bf16.msra.mxu1 %v1737_v58  ;;  %v1811_v58 = vld [vmem:[%s2522_s7 + $0x144] ss:$16 sps:$4 sm:$0xff]  }
 0x18a   :  { %837 = vmatprep.subr.bf16.mxu1 %v1742_v59  ;;  %v1814_v59 = vld [vmem:[%s2522_s7 + $0x14c] ss:$16 sps:$4 sm:$0xff]  }
 0x18b   :  { %1349 = vmatprep.subr.bf16.mxu0 %v1814_v59 }
 0x18d   :  { %838 = vmatpush1.bf16.msra.mxu1 %v1740_v60  ;;  %v1809_v60 = vld [vmem:[%s2522_s7 + $0x140] ss:$16 sps:$4 sm:$0xff]  }
 0x18e   :  { %839 = vmatprep.subr.bf16.mxu1 %v1745_v61  ;;  %v1812_v61 = vld [vmem:[%s2522_s7 + $0x148] ss:$16 sps:$4 sm:$0xff]  }
 0x18f   :  { %1350 = vmatpush1.bf16.msra.mxu0 %v1812_v61 }
 0x190   :  { %1351 = vmatprep.subr.bf16.mxu0 %v1820_v63 }
 0x191   :  { %840 = vmatpush1.bf16.msra.mxu1 %v1743_v62  ;;  %v1817_v62 = vld [vmem:[%s2522_s7 + $0x164] ss:$16 sps:$4 sm:$0xff]  }
 0x192   :  { %841 = vmatprep.subr.bf16.mxu1 %v1748_v0  ;;  %v1815_v0 = vld [vmem:[%s2522_s7 + $0x160] ss:$16 sps:$4 sm:$0xff]  }
 0x195   :  { %842 = vmatpush1.bf16.msra.mxu1 %v1746_v1  ;;  %v1818_v1 = vld [vmem:[%s2522_s7 + $0x168] ss:$16 sps:$4 sm:$0xff]  }
 0x196   :  { %1288 = vmatprep.subr.bf16.mxu1 %v1751_v2  ;;  %1352 = vmatpush1.bf16.msra.mxu0 %v1818_v1  ;;  %v1823_v2 = vld [vmem:[%s2522_s7 + $0x184] ss:$16 sps:$4 sm:$0xff]   ;;  %s1405_s7 = sshll.u32 %s1914_s6, 4  ;;  %s1406_s7 = int_to_ptr.vmem [resolvable:$true] %s1405_s7 }
 0x197   :  { %1353 = vmatprep.subr.bf16.mxu0 %v1826_v3  ;;  %s1865_s28 = scalar_lea.vmem %s1406_s7, 64  ;;  %p1870_p1 = scmp.lt.s32.totalorder %s1406_s7, %s1406_s7 }
 0x198   :  { %p1866_p0 = scmp.ne.s32.totalorder %s1406_s7, %s1865_s28  ;;  %p1871_p2 = scmp.lt.s32.totalorder %s1865_s28, %s1865_s28 }
 0x19a   :  { %1354 = vmatpush1.bf16.msra.mxu0 %v1824_v5  ;;  %p1872_p3 = por %p1871_p2, %p1870_p1 }
 0x19b   :  { %1355 = vmatprep.subr.bf16.mxu0 %v1832_v9 }
 0x19c   :  { %p1873_p4 = pnand %p1872_p3, %p1866_p0 }
 0x19e   :  { %1356 = vmatpush1.bf16.msra.mxu0 %v1830_v8 }
 0x19f   :  { %1357 = vmatprep.subr.bf16.mxu0 %v1838_v11 }
 0x1a2   :  { %1358 = vmatpush1.bf16.msra.mxu0 %v1836_v13 }
 0x1a3   :  { %1359 = vmatprep.subr.bf16.mxu0 %v1844_v15 }
 0x1a6   :  { %1360 = vmatpush1.bf16.msra.mxu0 %v1842_v17 }
 0x24b   :  { %v1598_v19 = vpop.f32.mrb[0].mxu1 }
 0x24c   :  { %v1599_v21 = vpop.f32.mrb[1].mxu1 }
 0x24d   :  { %v1600_v22 = vadd.f32 %v1599_v21, %v1598_v19  ;;  %v1601_v23 = vpop.f32.mrb[2].mxu1  ;;  %v740_v19 = vrot.slane %v735_v18, %v2226_v26 }
 0x24e   :  { %v1602_v24 = vpop.f32.mrb[3].mxu1 }
 0x24f   :  { %v707_v27 = vadd.f32 %v1600_v22, %v1481_v20  ;;  %v744_v20 = vrot.slane %v735_v18, %v2232_v28 }
 0x251   :  { %v712_v29 = vsub.f32 0.0, %v707_v27 }
 0x253   :  { %v713_v30 = vmul.f32 1.442695, %v712_v29 }
 0x255   :  { %1853 = vpow2.f32 %v713_v30 }
 0x25f   :  { %v1854_v31 = vpop.eup %1853 }
 0x260   :  { %v715_v32 = vadd.f32 1.0, %v1854_v31 }
 0x262   :  { %1855 = vrcp.f32 %v715_v32 }
 0x26c   :  { %v1856_v33 = vpop.eup %1855 }
 0x26d   :  { %v718_v35 = vpack.c.bf16 %v1856_v33, %v1856_v33 }
 0x26f   :  { %860 = vmatmul.mubr.bf16.vlgmr.msra.gmra.mrb[4].mxu1 %v718_v35  ;;  %1388 = vst [vmem:[#allocation4] sm:$0xf] %v718_v35 }
 0x270   :  { %1289 = vmatpush1.bf16.msra.mxu1 %v1749_v34 }
 0x271   :  { %1290 = vmatprep.subr.bf16.mxu1 %v1757_v36 }
 0x274   :  { %1291 = vmatpush1.bf16.msra.mxu1 %v1755_v37 }
 0x275   :  { %1292 = vmatprep.subr.bf16.mxu1 %v1763_v38 }
 0x278   :  { %1293 = vmatpush1.bf16.msra.mxu1 %v1761_v39 }
 0x279   :  { %1294 = vmatprep.subr.bf16.mxu1 %v1769_v40 }
 0x27c   :  { %1295 = vmatpush1.bf16.msra.mxu1 %v1767_v41 }
 0x27d   :  { %1296 = vmatprep.subr.bf16.mxu1 %v1775_v42 }
 0x280   :  { %1297 = vmatpush1.bf16.msra.mxu1 %v1773_v43 }
 0x281   :  { %1298 = vmatprep.subr.bf16.mxu1 %v1781_v44 }
 0x284   :  { %1299 = vmatpush1.bf16.msra.mxu1 %v1779_v45 }
 0x285   :  { %1300 = vmatprep.subr.bf16.mxu1 %v1787_v46 }
 0x288   :  { %1301 = vmatpush1.bf16.msra.mxu1 %v1785_v47 }
 0x289   :  { %1302 = vmatprep.subr.bf16.mxu1 %v1793_v48 }
 0x28c   :  { %1303 = vmatpush1.bf16.msra.mxu1 %v1791_v49 }
 0x28d   :  { %1304 = vmatprep.subr.bf16.mxu1 %v1799_v50 }
 0x290   :  { %1305 = vmatpush1.bf16.msra.mxu1 %v1797_v52 }
 0x291   :  { %1306 = vmatprep.subr.bf16.mxu1 %v1805_v54 }
 0x294   :  { %1307 = vmatpush1.bf16.msra.mxu1 %v1803_v56 }
 0x295   :  { %1308 = vmatprep.subr.bf16.mxu1 %v1811_v58 }
 0x298   :  { %1309 = vmatpush1.bf16.msra.mxu1 %v1809_v60 }
 0x299   :  { %1310 = vmatprep.subr.bf16.mxu1 %v1817_v62 }
 0x29c   :  { %1311 = vmatpush1.bf16.msra.mxu1 %v1815_v0 }
 0x29d   :  { %1312 = vmatprep.subr.bf16.mxu1 %v1823_v2 }
 0x2a0   :  { %1313 = vmatpush1.bf16.msra.mxu1 %v1821_v4 }
 0x2a1   :  { %1314 = vmatprep.subr.bf16.mxu1 %v1829_v7 }
 0x2a4   :  { %1315 = vmatpush1.bf16.msra.mxu1 %v1827_v6 }
 0x2a5   :  { %1316 = vmatprep.subr.bf16.mxu1 %v1835_v10 }
 0x2a8   :  { %1317 = vmatpush1.bf16.msra.mxu1 %v1833_v12 }
 0x2a9   :  { %1318 = vmatprep.subr.bf16.mxu1 %v1841_v14 }
 0x2ac   :  { %1319 = vmatpush1.bf16.msra.mxu1 %v1839_v16 }
 0x342   :  { %v861_v21 = vpop.f32.mrb[4].mxu1 }
 0x343   :  { %v862_v22 = vadd.f32 %v861_v21, %v740_v19  ;;  %v863_v23 = vpop.f32.mrb[5].mxu1 }
 0x344   :  { %v864_v24 = vadd.f32 %v863_v23, %v744_v20  ;;  %v865_v27 = vpop.f32.mrb[6].mxu1 }
 0x345   :  { %v868_v29 = vsub.f32 0.0, %v862_v22  ;;  %v866_v30 = vpop.f32.mrb[7].mxu1 }
 0x346   :  { %v869_v31 = vsub.f32 0.0, %v864_v24 }
 0x347   :  { %v870_v32 = vmul.f32 1.442695, %v868_v29 }
 0x348   :  { %v872_v33 = vmul.f32 1.442695, %v869_v31 }
 0x349   :  { %1857 = vpow2.f32 %v870_v32 }
 0x34a   :  { %1859 = vpow2.f32 %v872_v33 }
 0x353   :  { %v1858_v34 = vpop.eup %1857 }
 0x354   :  { %v1860_v35 = vpop.eup %1859  ;;  %v874_v36 = vadd.f32 1.0, %v1858_v34 }
 0x355   :  { %v875_v37 = vadd.f32 1.0, %v1860_v35 }
 0x356   :  { %1861 = vrcp.f32 %v874_v36 }
 0x357   :  { %1863 = vrcp.f32 %v875_v37 }
 0x360   :  { %v1862_v38 = vpop.eup %1861 }
 0x361   :  { %v1864_v39 = vpop.eup %1863  ;;  %v880_v41 = vpack.c.bf16 %v1862_v38, %v1862_v38 }
 0x362   :  { %v881_v40 = vpack.c.bf16 %v1864_v39, %v1864_v39 }
 0x364   :  { %1320 = vmatprep.mubr.bf16.mxu1 %v881_v40  ;;  %1361 = vmatprep.mubr.bf16.mxu0 %v881_v40 }
 0x365   :  { %1321 = vmatmul.mubr.bf16.vlgmr.msra.gmra.mrb[8].mxu1 %v880_v41  ;;  %1362 = vmatmul.mubr.bf16.vlgmr.msra.gmra.mrb[4].mxu0 %v880_v41 }
 0x366   :  { %1876 = shalt.err (!%p1873_p4)
}
 0x367   :  { %s1877_s11 = scalar_lea.hbm %s2525_s10, 64 }
 0x368   :  { %p1878_p5 = scmp.ne.s32.totalorder %s2525_s10, %s1877_s11  ;;  %p1881_p6 = scmp.lt.u32.totalorder %s1877_s11, %s2525_s10 }
 0x36a   :  { %p1883_p7 = pnand %p1881_p6, %p1878_p5 }
 0x36c   :  { %1886 = shalt.err (!%p1883_p7)
}
 0x36d   :  { %1408 = dma.vmem_to_hbm [thread:$0]  %s1406_s7, 64, %s2525_s10, [#allocation5]   ;;  %v958_v42 = vsub.s32 2, %v2223_v25  ;;  %v946_v43 = vld [vmem:[%s2523_s8] sm:$0xf]  ;;  %v962_v44 = vsub.s32 3, %v2223_v25 }
 0x36e   :  { %v951_v45 = vrot.slane %v946_v43, %v2226_v26  ;;  %v955_v47 = vrot.slane %v946_v43, %v2232_v28  ;;  %s1915_s10 = smov [#allocation2]  }
 0x36f   :  { %v959_v46 = vrot.slane %v946_v43, %v958_v42  ;;  %v963_v48 = vrot.slane %v946_v43, %v962_v44  ;;  %s1395_s4 = sshll.u32 %s1915_s10, 4  ;;  %s1396_s4 = int_to_ptr.vmem [resolvable:$true] %s1395_s4 }
 0x370   :  { %s1887_s8 = scalar_lea.vmem %s1396_s4, 256  ;;  %p1892_p9 = scmp.lt.s32.totalorder %s1396_s4, %s1396_s4 }
 0x371   :  { %p1888_p8 = scmp.ne.s32.totalorder %s1396_s4, %s1887_s8  ;;  %p1893_p10 = scmp.lt.s32.totalorder %s1887_s8, %s1887_s8 }
 0x373   :  { %p1894_p11 = por %p1893_p10, %p1892_p9 }
 0x375   :  { %p1895_p12 = pnand %p1894_p11, %p1888_p8 }
 0x438   :  { %v1322_v49 = vpop.f32.mrb[8].mxu1  ;;  %v1363_v50 = vpop.f32.mrb[4].mxu0 }
 0x439   :  { %v1323_v51 = vadd.f32 %v1322_v49, %v951_v45  ;;  %v1364_v52 = vadd.f32 %v1363_v50, %v959_v46  ;;  %v1324_v53 = vpop.f32.mrb[9].mxu1  ;;  %v1365_v54 = vpop.f32.mrb[5].mxu0 }
 0x43a   :  { %v1325_v55 = vadd.f32 %v1324_v53, %v955_v47  ;;  %v1366_v56 = vadd.f32 %v1365_v54, %v963_v48  ;;  %v1326_v57 = vpop.f32.mrb[10].mxu1  ;;  %v1367_v58 = vpop.f32.mrb[6].mxu0 }
 0x43b   :  { %v1327_v59 = vpop.f32.mrb[11].mxu1  ;;  %v1368_v25 = vpop.f32.mrb[7].mxu0 }
 0x43c   :  { %v1580_v60 = vpack.c.bf16 %v1325_v55, %v1323_v51  ;;  %v1581_v26 = vpack.c.bf16 %v1366_v56, %v1364_v52 }
 0x43e   :  { %1386 = vst [vmem:[#allocation2] sm:$0xff] %v1580_v60  ;;  %1387 = vst [vmem:[#allocation2 + $0x8] sm:$0xff] %v1581_v26 }
 0x43f   :  { %1898 = shalt.err (!%p1895_p12)
}
 0x440   :  { %s1899_s2 = scalar_lea.hbm %s2524_s9, 256 }
 0x441   :  { %p1900_p13 = scmp.ne.s32.totalorder %s2524_s9, %s1899_s2  ;;  %p1903_p0 = scmp.lt.u32.totalorder %s1899_s2, %s2524_s9 }
 0x443   :  { %p1905_p1 = pnand %p1903_p0, %p1900_p13 }
 0x445   :  { %1908 = shalt.err (!%p1905_p1)
}
 0x446   :  { %1398 = dma.vmem_to_hbm [thread:$0]  %s1396_s4, 256, %s2524_s9, [#allocation3]  }
 0x447   :  { %1909 = dma.done.wait [#allocation3], 256  }
 0x448   :  { %1910 = vsyncadd [#allocation3], 4294967040 }
 0x449   :  { %1911 = dma.done.wait [#allocation5], 64  }
 0x44a   :  { %1912 = vsyncadd [#allocation5], 4294967232 }
 0x44b   :  { %1415 = vsyncpa [#allocation3], 1 }
 0x44c   :  { %1416 = vsyncpa [#allocation5], 1 }

</bundles_post_ra>
